<compile_context>
chip_gen: v6e
topology: v6e:2x2x1
jax: 0.10.0
libtpu: 0.0.40
codegen_flags: <defaults>
</compile_context>

<pallas_src>
import functools

import jax
import jax.numpy as jnp
from jax.experimental import pallas as pl
from jax.experimental.pallas import tpu as pltpu

_LANE = 128
_DEFAULT_TILE_PACKED_ROWS = 8192   # packed rows per grid step (multiple of 8)


def _linear_kernel(x_ref, w_ref, b_ref, o_ref):
    # x_ref: (TE, K) f32, w_ref: (K, N) bf16, b_ref: (1, N) f32, o_ref: (TE, N) f32
    x = x_ref[...].astype(w_ref.dtype)            # bf16 operands -> single MXU pass
    acc = jnp.dot(x, w_ref[...], preferred_element_type=jnp.float32)
    o_ref[...] = (acc + b_ref[...]).astype(o_ref.dtype)


def pack_linear_params(weight, bias, *, param_dtype=jnp.bfloat16):
    """Pack torch.nn.Linear params once (hoisted out of the per-call path).

    weight: [D_out, D_in] (torch layout), bias: [D_out]
    Returns (w_packed [pack*D_in, pack*D_out], b_packed [1, pack*D_out]).
    """
    d_out, d_in = weight.shape
    pack = _LANE // d_in if (d_in < _LANE and _LANE % d_in == 0) else 1
    w_t = jnp.asarray(weight).T.astype(jnp.float32)          # [D_in, D_out]
    # Block-diagonal kron(I_pack, W^T): 8 edge rows ride one 128-wide lane row,
    # so loads/stores are fully lane-dense and the MXU sees K=128, N=256.
    w_packed = jnp.kron(jnp.eye(pack, dtype=jnp.float32), w_t).astype(param_dtype)
    b_packed = jnp.tile(jnp.asarray(bias).astype(jnp.float32), pack).reshape(1, pack * d_out)
    return w_packed, b_packed


@functools.partial(jax.jit, static_argnames=("tile_packed_rows",))
def sine_pos_edge_encoder(edge_attr, w_packed, b_packed,
                          tile_packed_rows=_DEFAULT_TILE_PACKED_ROWS):
    """y = edge_attr @ W^T + b via a tiled, lane-dense Pallas kernel.

    edge_attr: [E, D_in] float32
    w_packed / b_packed: outputs of pack_linear_params()
    returns:   [E, D_out] float32
    """
    E, d_in = edge_attr.shape
    K, N = w_packed.shape
    pack = K // d_in
    d_out = N // pack
    out_dtype = edge_attr.dtype
    itemsize = jnp.dtype(out_dtype).itemsize

    # --- packing (zero-copy on the aligned path) ----------------------------
    rem = E % pack
    if rem:
        # TODO(synk): have the graph-batching code pad edge counts to a
        # multiple of `pack` so this full-input pad copy never triggers.
        e_pad = E + (pack - rem)
        x = jnp.pad(edge_attr, ((0, pack - rem), (0, 0)))
    else:
        e_pad = E
        x = edge_attr
    e_p = e_pad // pack                         # packed rows
    x_packed = x.reshape(e_p, K)                # bitcast when rem == 0

    # --- tile selection ------------------------------------------------------
    te = min(tile_packed_rows, e_p)
    if te < e_p:
        te = max(8, (te // 8) * 8)              # sublane-aligned block
        n_tiles = pl.cdiv(e_p, te)
        # v7x megacore: with "parallel" semantics an odd tile count can idle one
        # of the two TensorCores; prefer an even count while tiles stay large.
        if n_tiles % 2 == 1 and te >= 2048:
            te = (te // 16) * 8
    grid = (pl.cdiv(e_p, te),)

    cost = pl.CostEstimate(
        flops=2 * e_p * K * N,                  # actual MXU work (block-diag weight)
        transcendentals=0,
        bytes_accessed=(e_p * K + e_p * N) * itemsize
        + K * N * jnp.dtype(w_packed.dtype).itemsize
        + N * 4,
    )
    # Double-buffered x + out tiles, resident weight/bias, plus slack.
    vmem_limit = max(
        2 * te * (K + N) * itemsize
        + K * N * jnp.dtype(w_packed.dtype).itemsize + 2 * N * 4 + (2 << 20),
        16 * 1024 * 1024,
    )

    out_packed = pl.pallas_call(
        _linear_kernel,
        out_shape=jax.ShapeDtypeStruct((e_p, N), out_dtype),
        grid_spec=pltpu.PrefetchScalarGridSpec(
            num_scalar_prefetch=0,
            grid=grid,
            in_specs=[
                pl.BlockSpec((te, K), lambda i: (i, 0)),   # streamed edge tiles
                pl.BlockSpec((K, N), lambda i: (0, 0)),    # resident bf16 weight
                pl.BlockSpec((1, N), lambda i: (0, 0)),    # resident f32 bias
            ],
            out_specs=pl.BlockSpec((te, N), lambda i: (i, 0)),
        ),
        compiler_params=pltpu.CompilerParams(
            dimension_semantics=("parallel",),
            vmem_limit_bytes=int(vmem_limit),
        ),
        cost_estimate=cost,
    )(x_packed, w_packed, b_packed)

    # Un-pack: packed row r holds edges r*pack .. r*pack+pack-1 side by side.
    out = out_packed.reshape(e_pad, d_out)      # bitcast
    if rem:
        out = out[:E]                           # only on the discouraged tail path
    return out


if __name__ == "__main__":
    # Shapes implied by the module: cfg.share.dim_edge_in -> embed_dim.
    dim_edge_in = 16      # cfg.share.dim_edge_in
    embed_dim = 32        # embed_dim

    key = jax.random.PRNGKey(0)
    k_w, k_b, k_x1, k_x2 = jax.random.split(key, 4)

    # Deterministic synthetic Linear params (torch layout: weight [out, in]).
    bound = 1.0 / (dim_edge_in ** 0.5)
    weight = jax.random.uniform(k_w, (embed_dim, dim_edge_in),
                                minval=-bound, maxval=bound, dtype=jnp.float32)
    bias = jax.random.uniform(k_b, (embed_dim,),
                              minval=-bound, maxval=bound, dtype=jnp.float32)

    # Pack once — hoisted out of the per-call path (perf-review item).
    w_packed, b_packed = pack_linear_params(weight, bias)

    def ref_f32(x):
        return x @ weight.T + bias

    def ref_bf16(x):   # same operand precision as the kernel's single MXU pass
        return jnp.dot(x.astype(jnp.bfloat16), weight.T.astype(jnp.bfloat16),
                       preferred_element_type=jnp.float32) + bias

    # Case 1: pack-aligned edge count -> fully zero-copy wrapper path.
    num_edges = 512
    x1 = jax.random.normal(k_x1, (num_edges, dim_edge_in), dtype=jnp.float32)
    y1 = jax.block_until_ready(sine_pos_edge_encoder(x1, w_packed, b_packed))
    assert y1.shape == (num_edges, embed_dim)
    assert jnp.allclose(y1, ref_bf16(x1), atol=1e-2, rtol=1e-2)
    assert jnp.allclose(y1, ref_f32(x1), atol=1e-1, rtol=1e-1)

    # Case 2: unaligned edge count -> exercises the tiny-tail fallback path.
    num_edges2 = 37
    x2 = jax.random.normal(k_x2, (num_edges2, dim_edge_in), dtype=jnp.float32)
    y2 = jax.block_until_ready(sine_pos_edge_encoder(x2, w_packed, b_packed))
    assert y2.shape == (num_edges2, embed_dim)
    assert jnp.allclose(y2, ref_bf16(x2), atol=1e-2, rtol=1e-2)

    print("KERNEL_OK")
</pallas_src>

<mosaic_0001>
module attributes {stable_mosaic.version = 11 : i64} {
  func.func @_linear_kernel(%arg0: i32, %arg1: memref<64x128xf32, #tpu.memory_space<vmem>>, %arg2: memref<128x256xbf16, #tpu.memory_space<vmem>>, %arg3: memref<1x256xf32, #tpu.memory_space<vmem>>, %arg4: memref<64x256xf32, #tpu.memory_space<vmem>>) attributes {dimension_semantics = [#tpu.dimension_semantics<parallel>], iteration_bounds = array<i64: 1>, scalar_prefetch = 0 : i64, scratch_operands = 0 : i64, tpu.core_type = #tpu.core_type<tc>, window_params = [{transform_indices = @transform_0, window_bounds = array<i64: 64, 128>}, {pipeline_mode = #tpu.pipeline_mode<synchronous>, transform_indices = @transform_1, window_bounds = array<i64: 128, 256>}, {pipeline_mode = #tpu.pipeline_mode<synchronous>, transform_indices = @transform_2, window_bounds = array<i64: 1, 256>}, {transform_indices = @transform_3, window_bounds = array<i64: 64, 256>}]} {
    %c0 = arith.constant 0 : index
    %c0_0 = arith.constant 0 : index
    %0 = vector.load %arg1[%c0, %c0_0] : memref<64x128xf32, #tpu.memory_space<vmem>>, vector<64x128xf32>
    %1 = arith.truncf %0 : vector<64x128xf32> to vector<64x128xbf16>
    %c0_1 = arith.constant 0 : index
    %c0_2 = arith.constant 0 : index
    %2 = vector.load %arg2[%c0_1, %c0_2] : memref<128x256xbf16, #tpu.memory_space<vmem>>, vector<128x256xbf16>
    %cst = arith.constant dense<0.000000e+00> : vector<64x256xf32>
    %3 = tpu.matmul %1, %2, %cst {dimension_numbers = #tpu.dot_dimension_numbers<[1], [0], [0], [1], [0, 0, 1, 1], [], []>} : vector<64x128xbf16>, vector<128x256xbf16>, vector<64x256xf32> -> vector<64x256xf32>
    %c0_3 = arith.constant 0 : index
    %c0_4 = arith.constant 0 : index
    %4 = vector.load %arg3[%c0_3, %c0_4] : memref<1x256xf32, #tpu.memory_space<vmem>>, vector<1x256xf32>
    %5 = vector.broadcast %4 : vector<1x256xf32> to vector<64x256xf32>
    %6 = arith.addf %3, %5 : vector<64x256xf32>
    %c0_5 = arith.constant 0 : index
    %c0_6 = arith.constant 0 : index
    %7 = vector.load %arg4[%c0_5, %c0_6] : memref<64x256xf32, #tpu.memory_space<vmem>>, vector<64x256xf32>
    tpu.vector_store %arg4[%c0_5, %c0_6], %6 {strides = array<i32>} : memref<64x256xf32, #tpu.memory_space<vmem>>, vector<64x256xf32>,
    return
  }
  func.func @transform_0(%arg0: i32) -> (i32, i32) {
    %c0_i32 = arith.constant 0 : i32
    %c0_i32_0 = arith.constant 0 : i32
    return %arg0, %c0_i32 : i32, i32
  }
  func.func @transform_1(%arg0: i32) -> (i32, i32) {
    %c0_i32 = arith.constant 0 : i32
    %c0_i32_0 = arith.constant 0 : i32
    %c0_i32_1 = arith.constant 0 : i32
    return %c0_i32, %c0_i32_0 : i32, i32
  }
  func.func @transform_2(%arg0: i32) -> (i32, i32) {
    %c0_i32 = arith.constant 0 : i32
    %c0_i32_0 = arith.constant 0 : i32
    %c0_i32_1 = arith.constant 0 : i32
    return %c0_i32, %c0_i32_0 : i32, i32
  }
  func.func @transform_3(%arg0: i32) -> (i32, i32) {
    %c0_i32 = arith.constant 0 : i32
    %c0_i32_0 = arith.constant 0 : i32
    return %arg0, %c0_i32 : i32, i32
  }
}

</mosaic_0001>

<bundles_post_ra>
// kernel: sine_pos_edge_encoder.1
= control target key start
LH: loop header
LB: loop body
LE: loop exit
PB: predicated region body
PF: predicated region fallthrough
CT: control target
= control target key end

     0   :  { %v285_v1 = vmov 0   ;;  %v45_v29 = vlaneseq  ;;  %s429_s1 = inlined_call_operand.vmem [shape: bf16[128,256], index: 1, kind: input, shape index: {}]   ;;  %s430_s0 = inlined_call_operand.vmem [shape: f32[64,128], index: 0, kind: input, shape index: {}]   ;;  %s431_s2 = inlined_call_operand.vmem [shape: f32[1,256], index: 2, kind: input, shape index: {}]   ;;  %s432_s3 = inlined_call_operand.vmem [shape: f32[64,256], index: 3, kind: output, shape index: {}]  }
   0x1   :  { %v261_v0 = vld [vmem:[%s429_s1 + $0x74] ss:$8 sps:$4 sm:$0xff]   ;;  %167 = vmatprep.mubr.bf16.mxu0 %v285_v1  ;;  %187 = vmatprep.mubr.bf16.mxu1 %v285_v1  ;;  %v263_v2 = vld [vmem:[%s429_s1 + $0x70] ss:$8 sps:$4 sm:$0xff]   ;;  %v264_v3 = vld [vmem:[%s429_s1 + $0x64] ss:$8 sps:$4 sm:$0xff]  }
   0x2   :  { %135 = vmatprep.subr.bf16.mxu0 %v261_v0  ;;  %244 = vmatprep.subr.bf16.mxu1 %v261_v0  ;;  %v266_v4 = vld [vmem:[%s429_s1 + $0x60] ss:$8 sps:$4 sm:$0xff]   ;;  %v267_v5 = vld [vmem:[%s429_s1 + $0x54] ss:$8 sps:$4 sm:$0xff]   ;;  %v269_v6 = vld [vmem:[%s429_s1 + $0x50] ss:$8 sps:$4 sm:$0xff]  }
   0x3   :  { %136 = vmatpush1.bf16.msra.mxu0 %v263_v2  ;;  %252 = vmatpush1.bf16.msra.mxu1 %v263_v2  ;;  %v270_v7 = vld [vmem:[%s429_s1 + $0x44] ss:$8 sps:$4 sm:$0xff]   ;;  %v272_v8 = vld [vmem:[%s429_s1 + $0x40] ss:$8 sps:$4 sm:$0xff]   ;;  %v273_v9 = vld [vmem:[%s429_s1 + $0x34] ss:$8 sps:$4 sm:$0xff]  }
   0x4   :  { %137 = vmatprep.subr.bf16.mxu0 %v264_v3  ;;  %245 = vmatprep.subr.bf16.mxu1 %v264_v3  ;;  %v275_v10 = vld [vmem:[%s429_s1 + $0x30] ss:$8 sps:$4 sm:$0xff]   ;;  %v276_v11 = vld [vmem:[%s429_s1 + $0x24] ss:$8 sps:$4 sm:$0xff]   ;;  %v278_v12 = vld [vmem:[%s429_s1 + $0x20] ss:$8 sps:$4 sm:$0xff]  }
   0x5   :  { %v279_v13 = vld [vmem:[%s429_s1 + $0x14] ss:$8 sps:$4 sm:$0xff]   ;;  %v281_v14 = vld [vmem:[%s429_s1 + $0x10] ss:$8 sps:$4 sm:$0xff]   ;;  %v282_v15 = vld [vmem:[%s429_s1 + $0x4] ss:$8 sps:$4 sm:$0xff]  }
   0x6   :  { %v284_v16 = vld [vmem:[%s429_s1] ss:$8 sps:$4 sm:$0xff]   ;;  %v17_v23 = vld [vmem:[%s430_s0 + $0x10] sm:$0xff]  ;;  %v18_v24 = vld [vmem:[%s430_s0 + $0x18] sm:$0xff]  ;;  %v46_v30 = vshrl.u32 %v45_v29, 7 }
   0x7   :  { %138 = vmatpush1.bf16.msra.mxu0 %v266_v4  ;;  %253 = vmatpush1.bf16.msra.mxu1 %v266_v4  ;;  %v15_v17 = vld [vmem:[%s430_s0] sm:$0xff]  ;;  %v16_v18 = vld [vmem:[%s430_s0 + $0x8] sm:$0xff]  ;;  %v21_v25 = vld [vmem:[%s430_s0 + $0x30] sm:$0xff]  ;;  %v24_v27 = vpack.c.bf16 %v18_v24, %v17_v23 }
   0x8   :  { %139 = vmatprep.subr.bf16.mxu0 %v267_v5  ;;  %246 = vmatprep.subr.bf16.mxu1 %v267_v5  ;;  %v19_v19 = vld [vmem:[%s430_s0 + $0x20] sm:$0xff]  ;;  %v20_v20 = vld [vmem:[%s430_s0 + $0x28] sm:$0xff]  ;;  %v23_v21 = vpack.c.bf16 %v16_v18, %v15_v17  ;;  %v22_v26 = vld [vmem:[%s430_s0 + $0x38] sm:$0xff]  ;;  %v47_v31 = vsub.s32 0, %v46_v30  ;;  %v51_v33 = vsub.s32 1, %v46_v30 }
   0x9   :  { %v25_v22 = vpack.c.bf16 %v20_v20, %v19_v19  ;;  %v26_v28 = vpack.c.bf16 %v22_v26, %v21_v25  ;;  %v43_v32 = vld [vmem:[%s431_s2] sm:$0x3] }
   0xa   :  { %v48_v34 = vrot.slane %v43_v32, %v47_v31  ;;  %v52_v35 = vrot.slane %v43_v32, %v51_v33 }
   0xb   :  { %140 = vmatpush1.bf16.msra.mxu0 %v269_v6  ;;  %254 = vmatpush1.bf16.msra.mxu1 %v269_v6 }
   0xc   :  { %141 = vmatprep.subr.bf16.mxu0 %v270_v7  ;;  %247 = vmatprep.subr.bf16.mxu1 %v270_v7 }
   0xf   :  { %142 = vmatpush1.bf16.msra.mxu0 %v272_v8  ;;  %255 = vmatpush1.bf16.msra.mxu1 %v272_v8 }
  0x10   :  { %143 = vmatprep.subr.bf16.mxu0 %v273_v9  ;;  %248 = vmatprep.subr.bf16.mxu1 %v273_v9 }
  0x13   :  { %144 = vmatpush1.bf16.msra.mxu0 %v275_v10  ;;  %256 = vmatpush1.bf16.msra.mxu1 %v275_v10 }
  0x14   :  { %145 = vmatprep.subr.bf16.mxu0 %v276_v11  ;;  %249 = vmatprep.subr.bf16.mxu1 %v276_v11 }
  0x17   :  { %146 = vmatpush1.bf16.msra.mxu0 %v278_v12  ;;  %257 = vmatpush1.bf16.msra.mxu1 %v278_v12 }
  0x18   :  { %147 = vmatprep.subr.bf16.mxu0 %v279_v13  ;;  %250 = vmatprep.subr.bf16.mxu1 %v279_v13 }
  0x1b   :  { %148 = vmatpush1.bf16.msra.mxu0 %v281_v14  ;;  %258 = vmatpush1.bf16.msra.mxu1 %v281_v14 }
  0x1c   :  { %149 = vmatprep.subr.bf16.mxu0 %v282_v15  ;;  %251 = vmatprep.subr.bf16.mxu1 %v282_v15 }
  0x1f   :  { %150 = vmatpush1.bf16.msra.mxu0 %v284_v16  ;;  %259 = vmatpush1.bf16.msra.mxu1 %v284_v16 }
  0x22   :  { %168 = vmatmul.mubr.bf16.vlgmr.msra.gmra.mxu0 %v23_v21  ;;  %188 = vmatmul.mubr.bf16.vlgmr.msra.gmra.mxu1 %v25_v22 }
  0x23   :  { %177 = vmatprep.mubr.bf16.mxu0 %v285_v1  ;;  %197 = vmatprep.mubr.bf16.mxu1 %v285_v1 }
  0x2a   :  { %178 = vmatmul.mubr.bf16.gmra.mxu0 %v24_v27  ;;  %198 = vmatmul.mubr.bf16.gmra.mxu1 %v26_v28 }
  0xe2   :  { %v169_v36 = vpop.f32.mrf.mxu0  ;;  %v189_v37 = vpop.f32.mrf.mxu1 }
  0xe3   :  { %v170_v38 = vadd.f32 %v169_v36, %v48_v34  ;;  %v190_v39 = vadd.f32 %v189_v37, %v48_v34 }
  0xe4   :  { %v171_v40 = vpop.f32.mrf.mxu0  ;;  %v191_v41 = vpop.f32.mrf.mxu1 }
  0xe5   :  { %208 = vst [vmem:[%s432_s3] sm:$0xff] %v170_v38  ;;  %216 = vst [vmem:[%s432_s3 + $0x40] sm:$0xff] %v190_v39  ;;  %v172_v42 = vadd.f32 %v171_v40, %v52_v35  ;;  %v192_v43 = vadd.f32 %v191_v41, %v52_v35 }
  0xe6   :  { %v173_v44 = vpop.f32.mrf.mxu0  ;;  %v193_v45 = vpop.f32.mrf.mxu1 }
  0xe7   :  { %209 = vst [vmem:[%s432_s3 + $0x8] sm:$0xff] %v172_v42  ;;  %217 = vst [vmem:[%s432_s3 + $0x48] sm:$0xff] %v192_v43  ;;  %v174_v46 = vadd.f32 %v173_v44, %v48_v34  ;;  %v194_v47 = vadd.f32 %v193_v45, %v48_v34 }
  0xe8   :  { %v175_v48 = vpop.f32.mrf.mxu0  ;;  %v195_v49 = vpop.f32.mrf.mxu1 }
  0xe9   :  { %210 = vst [vmem:[%s432_s3 + $0x10] sm:$0xff] %v174_v46  ;;  %218 = vst [vmem:[%s432_s3 + $0x50] sm:$0xff] %v194_v47  ;;  %v176_v50 = vadd.f32 %v175_v48, %v52_v35  ;;  %v196_v51 = vadd.f32 %v195_v49, %v52_v35 }
  0xea   :  { %v179_v52 = vpop.f32.mrf.mxu0  ;;  %v199_v53 = vpop.f32.mrf.mxu1 }
  0xeb   :  { %211 = vst [vmem:[%s432_s3 + $0x18] sm:$0xff] %v176_v50  ;;  %219 = vst [vmem:[%s432_s3 + $0x58] sm:$0xff] %v196_v51  ;;  %v180_v54 = vadd.f32 %v179_v52, %v48_v34  ;;  %v200_v55 = vadd.f32 %v199_v53, %v48_v34 }
  0xec   :  { %v181_v56 = vpop.f32.mrf.mxu0  ;;  %v201_v57 = vpop.f32.mrf.mxu1 }
  0xed   :  { %212 = vst [vmem:[%s432_s3 + $0x20] sm:$0xff] %v180_v54  ;;  %220 = vst [vmem:[%s432_s3 + $0x60] sm:$0xff] %v200_v55  ;;  %v182_v58 = vadd.f32 %v181_v56, %v52_v35  ;;  %v202_v59 = vadd.f32 %v201_v57, %v52_v35 }
  0xee   :  { %v183_v60 = vpop.f32.mrf.mxu0  ;;  %v203_v61 = vpop.f32.mrf.mxu1 }
  0xef   :  { %213 = vst [vmem:[%s432_s3 + $0x28] sm:$0xff] %v182_v58  ;;  %221 = vst [vmem:[%s432_s3 + $0x68] sm:$0xff] %v202_v59  ;;  %v184_v62 = vadd.f32 %v183_v60, %v48_v34  ;;  %v204_v63 = vadd.f32 %v203_v61, %v48_v34 }
  0xf0   :  { %v185_v0 = vpop.f32.mrf.mxu0  ;;  %v205_v1 = vpop.f32.mrf.mxu1 }
  0xf1   :  { %214 = vst [vmem:[%s432_s3 + $0x30] sm:$0xff] %v184_v62  ;;  %222 = vst [vmem:[%s432_s3 + $0x70] sm:$0xff] %v204_v63  ;;  %v186_v2 = vadd.f32 %v185_v0, %v52_v35  ;;  %v206_v3 = vadd.f32 %v205_v1, %v52_v35 }
  0xf3   :  { %215 = vst [vmem:[%s432_s3 + $0x38] sm:$0xff] %v186_v2  ;;  %223 = vst [vmem:[%s432_s3 + $0x78] sm:$0xff] %v206_v3 }

</bundles_post_ra>
